<compile_context>
chip_gen: v5e
topology: v5e:2x2
jax: 0.10.0
libtpu: 0.0.40
codegen_flags: <defaults>
</compile_context>

<pallas_src>
import functools

import jax
import jax.numpy as jnp
from jax.experimental import pallas as pl
from jax.experimental.pallas import tpu as pltpu


def _round_up(x, m):
    return (x + m - 1) // m * m


def _patch_embed_kernel(p_ref, w_ref, b_ref, o_ref):
    # p_ref: (tile_n, K)  bf16 patch rows.  Rows beyond N in the partial last
    #        block are uninitialized garbage — this is safe ONLY because each
    #        output row depends solely on its own input row and Pallas masks
    #        the partial output write-back.  Do not add cross-row reductions.
    # w_ref: (K, D)       bf16 projection weight, resident across the grid.
    # b_ref: (1, D)       f32 bias.
    # o_ref: (tile_n, D)  output tokens.
    acc = jnp.dot(p_ref[...], w_ref[...], preferred_element_type=jnp.float32)
    o_ref[...] = (acc + b_ref[...]).astype(o_ref.dtype)


@functools.partial(
    jax.jit,
    static_argnames=("patch_size", "tile_n", "compute_dtype", "out_dtype"))
def _patch_embed_impl(x, weight, bias, *, patch_size, tile_n, compute_dtype,
                      out_dtype):
    B, C, T, H, W = x.shape
    p = patch_size
    D = weight.shape[0]
    Hp, Wp = H // p, W // p
    num_patches = Hp * Wp
    N = B * T * num_patches
    K = C * p * p

    # --- glue: b c t (hp p) (wp q) -> (b t hp wp) (c p q), fused with the
    # bf16 cast under jit into a single HBM pass (no separate pad pass).
    # Per-patch flatten order (c, ph, pw) matches nn.Conv2d's weight layout.
    # TODO(synk): fuse this pass into the pallas_call itself (in-kernel
    # (C,p,Wp,p)->(Wp, C*p*p) rearrangement) to drop a full HBM round trip;
    # needs a Mosaic-safe relayout for the lane-interleaved (Wp, pw) split.
    patches = x.reshape(B, C, T, Hp, p, Wp, p)
    patches = jnp.transpose(patches, (0, 2, 3, 5, 1, 4, 6))  # (B,T,Hp,Wp,C,p,p)
    patches = patches.reshape(N, K).astype(compute_dtype)

    # Conv weight (D, C, p, p) -> (K, D); bias -> (1, D) kept in f32.
    w_mat = weight.reshape(D, K).T.astype(compute_dtype)
    b_mat = bias.astype(jnp.float32).reshape(1, D)

    # Token-row tile: multiple of 8 (sublanes), capped at N.
    tile_n = _round_up(max(8, min(tile_n, N)), 8)
    grid_n = pl.cdiv(N, tile_n)

    out_itemsize = jnp.dtype(out_dtype).itemsize
    # Double-buffered VMEM footprint.  Scoped default: 16 MiB (v5e) / 32 MiB
    # (v6e, v7x); v7x physical VMEM is 64 MiB.  Weight counted twice to be
    # conservative (default double-buffering even though its index is
    # grid-constant); f32 accumulator tile included.
    vmem_est = (2 * tile_n * K * 2                 # patch blocks (bf16)
                + 2 * K * D * 2                    # weight (bf16)
                + 2 * D * 4                        # bias (f32)
                + 2 * tile_n * D * out_itemsize    # output blocks
                + tile_n * D * 4)                  # f32 accumulator
    vmem_limit = int(min(64 << 20, max(32 << 20, vmem_est + (8 << 20))))

    cost = pl.CostEstimate(
        flops=2 * N * K * D,
        transcendentals=0,
        bytes_accessed=(N * K * 2 + K * D * 2 + D * 4 + N * D * out_itemsize),
    )

    # TODO(synk): on v7x try pltpu.CORE_PARALLEL on this axis (plain
    # "parallel" may not engage both TensorCores) and pl.Buffered(1) on the
    # grid-constant weight/bias specs for extra VMEM headroom.
    out = pl.pallas_call(
        _patch_embed_kernel,
        out_shape=jax.ShapeDtypeStruct((N, D), out_dtype),
        grid_spec=pltpu.PrefetchScalarGridSpec(
            num_scalar_prefetch=0,
            grid=(grid_n,),
            in_specs=[
                pl.BlockSpec((tile_n, K), lambda i: (i, 0)),
                pl.BlockSpec((K, D), lambda i: (0, 0)),
                pl.BlockSpec((1, D), lambda i: (0, 0)),
            ],
            out_specs=pl.BlockSpec((tile_n, D), lambda i: (i, 0)),
        ),
        compiler_params=pltpu.CompilerParams(
            dimension_semantics=("parallel",),
            vmem_limit_bytes=vmem_limit),
        cost_estimate=cost,
    )(patches, w_mat, b_mat)

    return out.reshape(B * T, num_patches, D)


def patch_embed_forward(x, weight, bias, patch_size, *, tile_n=512,
                        compute_dtype=jnp.bfloat16, out_dtype=None):
    """TimeSformer PatchEmbed forward.

    x: (B, C, T, H, W); weight: (D, C, p, p); bias: (D,).
    Returns (tokens, T, W_out) with tokens of shape (B*T, num_patches, D).

    tile_n: token rows per MXU tile.  Use a multiple of 128; 512 is a good
      default on v5e/v6e/v7x (VMEM limit is sized automatically).
    out_dtype: defaults to compute_dtype (bf16).  f32-conv exactness is
      already traded away by the bf16 MXU operands; a bf16 output halves the
      dominant HBM write stream.  Pass jnp.float32 if f32 tokens are needed.
    """
    B, C, T, H, W = x.shape
    out_dtype = compute_dtype if out_dtype is None else out_dtype
    tokens = _patch_embed_impl(x, weight, bias, patch_size=patch_size,
                               tile_n=tile_n, compute_dtype=compute_dtype,
                               out_dtype=out_dtype)
    return tokens, T, W // patch_size


if __name__ == "__main__":
    # Small synthetic config consistent with PatchEmbed's forward.
    B, C, T, H, W = 2, 4, 2, 16, 16
    patch_size = 8
    embed_dim = 32

    key = jax.random.PRNGKey(0)
    kx, kw, kb = jax.random.split(key, 3)
    x = jax.random.normal(kx, (B, C, T, H, W), dtype=jnp.float32)
    # Deterministic synthetic conv parameters (shapes from nn.Conv2d).
    weight = jax.random.normal(
        kw, (embed_dim, C, patch_size, patch_size), dtype=jnp.float32) * 0.02
    bias = jax.random.normal(kb, (embed_dim,), dtype=jnp.float32) * 0.02

    tokens, T_out, W_out = patch_embed_forward(x, weight, bias, patch_size)
    tokens = jax.block_until_ready(tokens)

    # Reference check against a plain-JAX f32 strided conv (same semantics).
    x_bt = jnp.transpose(x, (0, 2, 1, 3, 4)).reshape(B * T, C, H, W)
    ref = jax.lax.conv_general_dilated(
        x_bt, weight, window_strides=(patch_size, patch_size),
        padding="VALID", dimension_numbers=("NCHW", "OIHW", "NCHW"))
    ref = ref + bias.reshape(1, embed_dim, 1, 1)
    ref = ref.reshape(B * T, embed_dim, -1).transpose(0, 2, 1)

    assert tokens.shape == (B * T, (H // patch_size) * (W // patch_size), embed_dim)
    assert tokens.dtype == jnp.dtype(jnp.bfloat16)
    assert T_out == T and W_out == W // patch_size
    # bf16 operands + bf16 output (f32 MXU accumulation) vs f32 conv reference.
    assert jnp.allclose(tokens.astype(jnp.float32), ref, atol=3e-2, rtol=3e-2)
    print("KERNEL_OK")
</pallas_src>

<mosaic_0001>
module attributes {stable_mosaic.version = 11 : i64} {
  func.func @_patch_embed_kernel(%arg0: i32, %arg1: memref<16x256xbf16, #tpu.memory_space<vmem>>, %arg2: memref<256x32xbf16, #tpu.memory_space<vmem>>, %arg3: memref<1x32xf32, #tpu.memory_space<vmem>>, %arg4: memref<16x32xbf16, #tpu.memory_space<vmem>>) attributes {dimension_semantics = [#tpu.dimension_semantics<parallel>], iteration_bounds = array<i64: 1>, scalar_prefetch = 0 : i64, scratch_operands = 0 : i64, tpu.core_type = #tpu.core_type<tc>, window_params = [{transform_indices = @transform_0, window_bounds = array<i64: 16, 256>}, {pipeline_mode = #tpu.pipeline_mode<synchronous>, transform_indices = @transform_1, window_bounds = array<i64: 256, 32>}, {pipeline_mode = #tpu.pipeline_mode<synchronous>, transform_indices = @transform_2, window_bounds = array<i64: 1, 32>}, {transform_indices = @transform_3, window_bounds = array<i64: 16, 32>}]} {
    %c0 = arith.constant 0 : index
    %c0_0 = arith.constant 0 : index
    %0 = vector.load %arg1[%c0, %c0_0] : memref<16x256xbf16, #tpu.memory_space<vmem>>, vector<16x256xbf16>
    %c0_1 = arith.constant 0 : index
    %c0_2 = arith.constant 0 : index
    %1 = vector.load %arg2[%c0_1, %c0_2] : memref<256x32xbf16, #tpu.memory_space<vmem>>, vector<256x32xbf16>
    %cst = arith.constant dense<0.000000e+00> : vector<16x32xf32>
    %2 = tpu.matmul %0, %1, %cst {dimension_numbers = #tpu.dot_dimension_numbers<[1], [0], [0], [1], [0, 0, 1, 1], [], []>} : vector<16x256xbf16>, vector<256x32xbf16>, vector<16x32xf32> -> vector<16x32xf32>
    %c0_3 = arith.constant 0 : index
    %c0_4 = arith.constant 0 : index
    %3 = vector.load %arg3[%c0_3, %c0_4] : memref<1x32xf32, #tpu.memory_space<vmem>>, vector<1x32xf32>
    %4 = vector.broadcast %3 : vector<1x32xf32> to vector<16x32xf32>
    %5 = arith.addf %2, %4 : vector<16x32xf32>
    %6 = arith.truncf %5 : vector<16x32xf32> to vector<16x32xbf16>
    %c0_5 = arith.constant 0 : index
    %c0_6 = arith.constant 0 : index
    %7 = vector.load %arg4[%c0_5, %c0_6] : memref<16x32xbf16, #tpu.memory_space<vmem>>, vector<16x32xbf16>
    tpu.vector_store %arg4[%c0_5, %c0_6], %6 {strides = array<i32>} : memref<16x32xbf16, #tpu.memory_space<vmem>>, vector<16x32xbf16>,
    return
  }
  func.func @transform_0(%arg0: i32) -> (i32, i32) {
    %c0_i32 = arith.constant 0 : i32
    %c0_i32_0 = arith.constant 0 : i32
    return %arg0, %c0_i32 : i32, i32
  }
  func.func @transform_1(%arg0: i32) -> (i32, i32) {
    %c0_i32 = arith.constant 0 : i32
    %c0_i32_0 = arith.constant 0 : i32
    %c0_i32_1 = arith.constant 0 : i32
    return %c0_i32, %c0_i32_0 : i32, i32
  }
  func.func @transform_2(%arg0: i32) -> (i32, i32) {
    %c0_i32 = arith.constant 0 : i32
    %c0_i32_0 = arith.constant 0 : i32
    %c0_i32_1 = arith.constant 0 : i32
    return %c0_i32, %c0_i32_0 : i32, i32
  }
  func.func @transform_3(%arg0: i32) -> (i32, i32) {
    %c0_i32 = arith.constant 0 : i32
    %c0_i32_0 = arith.constant 0 : i32
    return %arg0, %c0_i32 : i32, i32
  }
}

</mosaic_0001>

<bundles_post_ra>
// kernel: _patch_embed_impl.1
= control target key start
LH: loop header
LB: loop body
LE: loop exit
PB: predicated region body
PF: predicated region fallthrough
CT: control target
= control target key end

     0   :  { %s419_s0 = inlined_call_operand.vmem [shape: bf16[16,256], index: 0, kind: input, shape index: {}]   ;;  %s420_s1 = inlined_call_operand.vmem [shape: bf16[256,32], index: 1, kind: input, shape index: {}]   ;;  %s421_s2 = inlined_call_operand.vmem [shape: f32[1,32], index: 2, kind: input, shape index: {}]   ;;  %s422_s3 = inlined_call_operand.hbm [shape: bf16[16,32], index: 3, kind: output, shape index: {}]  }
   0x1   :  { %v291_v0 = vld [vmem:[%s420_s1 + $0x38] sm:$0xff]  ;;  %v290_v2 = vld [vmem:[%s420_s1 + $0x30] sm:$0xff]  ;;  %v289_v4 = vld [vmem:[%s420_s1 + $0x28] sm:$0xff] }
   0x2   :  { %v299_v1 = vld [vmem:[%s420_s1 + $0x78] sm:$0xff]  ;;  %159 = vmatpush.bf16.msra.mxu0 %v291_v0  ;;  %v298_v3 = vld [vmem:[%s420_s1 + $0x70] sm:$0xff]  ;;  %v297_v5 = vld [vmem:[%s420_s1 + $0x68] sm:$0xff] }
   0x3   :  { %173 = vmatpush.bf16.msra.mxu1 %v299_v1 }
   0x6   :  { %160 = vmatpush.bf16.msra.mxu0 %v290_v2 }
   0x7   :  { %174 = vmatpush.bf16.msra.mxu1 %v298_v3 }
   0x8   :  { %8 = vsyncpa [#allocation3], 0  ;;  %v288_v6 = vld [vmem:[%s420_s1 + $0x20] sm:$0xff]  ;;  %v287_v8 = vld [vmem:[%s420_s1 + $0x18] sm:$0xff]  ;;  %vm189_vm0 = vcmask 257024   ;;  %s198_s29 = sshll.u32 %s422_s3, 4  ;;  %s199_s29 = int_to_ptr.hbm [resolvable:$true] %s198_s29 }
   0x9   :  { %v296_v7 = vld [vmem:[%s420_s1 + $0x60] sm:$0xff]  ;;  %v295_v9 = vld [vmem:[%s420_s1 + $0x58] sm:$0xff]  ;;  %v286_v10 = vld [vmem:[%s420_s1 + $0x10] sm:$0xff]  ;;  %s332_s30 = smov 4  }
   0xa   :  { %161 = vmatpush.bf16.msra.mxu0 %v289_v4  ;;  %v294_v11 = vld [vmem:[%s420_s1 + $0x50] sm:$0xff]  ;;  %v285_v12 = vld [vmem:[%s420_s1 + $0x8] sm:$0xff]  ;;  %v284_v14 = vld [vmem:[%s420_s1] sm:$0xff] }
   0xb   :  { %175 = vmatpush.bf16.msra.mxu1 %v297_v5  ;;  %v293_v13 = vld [vmem:[%s420_s1 + $0x48] sm:$0xff]  ;;  %v292_v15 = vld [vmem:[%s420_s1 + $0x40] sm:$0xff] }
   0xc   :  { %v212_v16 = vld [vmem:[%s419_s0] sm:$0xf]  ;;  %v283_v17 = vld [vmem:[%s419_s0 + $0x4] sm:$0xf0]  ;;  %v282_v18 = vld [vmem:[%s419_s0 + $0x4] sm:$0xf] }
   0xd   :  { %v214_v19 = vld [vmem:[%s419_s0 + $0x8] sm:$0xf0]  ;;  %v213_v20 = vor.u32 %v283_v17, %v212_v16  ;;  %v303_v22 = vld [vmem:[%s421_s2] ss:$0 sm:$0xff]  ;;  %s330_s0 = smov [#allocation2]   ;;  %s331_s2 = smov 64  }
   0xe   :  { %162 = vmatpush.bf16.msra.mxu0 %v288_v6  ;;  %v217_v21 = vor.u32 %v282_v18, %v214_v19  ;;  %s196_s26 = sshll.u32 %s330_s0, 4  ;;  %s197_s26 = int_to_ptr.vmem [resolvable:$true] %s196_s26 }
   0xf   :  { %176 = vmatpush.bf16.msra.mxu1 %v296_v7 }
  0x12   :  { %163 = vmatpush.bf16.msra.mxu0 %v287_v8 }
  0x13   :  { %177 = vmatpush.bf16.msra.mxu1 %v295_v9 }
  0x16   :  { %164 = vmatpush.bf16.msra.mxu0 %v286_v10 }
  0x17   :  { %178 = vmatpush.bf16.msra.mxu1 %v294_v11 }
  0x1a   :  { %165 = vmatpush.bf16.msra.mxu0 %v285_v12 }
  0x1b   :  { %179 = vmatpush.bf16.msra.mxu1 %v293_v13 }
  0x1e   :  { %166 = vmatpush.bf16.msra.mxu0 %v284_v14 }
  0x1f   :  { %180 = vmatpush.bf16.msra.mxu1 %v292_v15 }
  0x21   :  { %167 = vmatmul.bf16.vlgmr.msra.gmra.mxu0 %v213_v20 }
  0x22   :  { %181 = vmatmul.bf16.vlgmr.msra.gmra.mxu1 %v217_v21 }
  0x9e   :  { %v168_v23 = vpop.f32.mrf.mxu0 }
  0x9f   :  { %v182_v24 = vpop.f32.mrf.mxu1  ;;  %v169_v25 = vadd.f32 %v303_v22, %v168_v23 }
  0xa1   :  { %v183_v26 = vadd.f32 %v182_v24, %v169_v25 }
  0xa3   :  { %v187_v27 = vpack.c.bf16 %v183_v26, %v183_v26 }
  0xa5   :  { %190 = vst.msk [vmem:[#allocation2] sm:$0xf] %vm189_vm0, %v187_v27 }
  0xa6   :  { %v170_v28 = vpop.f32.mrf.mxu0 }
  0xa7   :  { %v171_v29 = vadd.f32 %v303_v22, %v170_v28  ;;  %v184_v30 = vpop.f32.mrf.mxu1 }
  0xa9   :  { %v185_v31 = vadd.f32 %v184_v30, %v171_v29 }
  0xab   :  { %v188_v32 = vpack.c.bf16 %v185_v31, %v185_v31 }
  0xad   :  { %191 = vst.msk [vmem:[#allocation2 + $0x4] sm:$0xf] %vm189_vm0, %v188_v32 }
  0xae   :  { %204 = dma.vmem_to_hbm [thread:$0]  %s197_s26, 128, %s199_s29, [#allocation3], %s331_s2, %s331_s2, %s332_s30  }
  0xaf   :  { %328 = dma.done.wait [#allocation3], 128  }
  0xb0   :  { %329 = vsyncadd [#allocation3], 4294967168 }
  0xb1   :  { %209 = vsyncpa [#allocation3], 1 }

</bundles_post_ra>
